<compile_context>
chip_gen: v7x
topology: tpu7x:2x2x1
jax: 0.10.0
libtpu: 0.0.40
codegen_flags: <defaults>
</compile_context>

<pallas_src>
import functools

import jax
import jax.numpy as jnp
from jax.experimental import pallas as pl
from jax.experimental.pallas import tpu as pltpu


def _round_up(x, m):
    return ((x + m - 1) // m) * m


def _layernorm(h, g, beta, eps):
    # h: (TM, D) f32.  Biased variance, eps inside rsqrt (matches PyTorch).
    mean = jnp.mean(h, axis=-1, keepdims=True)
    centered = h - mean
    var = jnp.mean(centered * centered, axis=-1, keepdims=True)
    return centered * jax.lax.rsqrt(var + eps) * g + beta


def _self_output_kernel(x_ref, res_ref, wt_ref, b_ref, g_ref, beta_ref, o_ref,
                        *, eps):
    # x_ref, res_ref, o_ref : (TM, D) activations in their native dtype
    # wt_ref                : (D, D) pre-transposed weight (in_feat, out_feat)
    # b_ref, g_ref, beta_ref: (1, D) f32
    y = jnp.dot(x_ref[...], wt_ref[...], preferred_element_type=jnp.float32)
    h = (y + b_ref[...].astype(jnp.float32)
         + res_ref[...].astype(jnp.float32))
    out = _layernorm(h, g_ref[...].astype(jnp.float32),
                     beta_ref[...].astype(jnp.float32), eps)
    o_ref[...] = out.astype(o_ref.dtype)


def _self_output_kernel_ktiled(x_ref, res_ref, wt_ref, b_ref, g_ref, beta_ref,
                               o_ref, acc_ref, *, eps):
    # Contraction split over a K grid axis; acc_ref: (TM, D) f32 scratch.
    k = pl.program_id(1)

    @pl.when(k == 0)
    def _():
        acc_ref[...] = jnp.zeros_like(acc_ref)

    acc_ref[...] += jnp.dot(x_ref[...], wt_ref[...],
                            preferred_element_type=jnp.float32)

    @pl.when(k == pl.num_programs(1) - 1)
    def _():
        h = (acc_ref[...] + b_ref[...].astype(jnp.float32)
             + res_ref[...].astype(jnp.float32))
        out = _layernorm(h, g_ref[...].astype(jnp.float32),
                         beta_ref[...].astype(jnp.float32), eps)
        o_ref[...] = out.astype(o_ref.dtype)


def _physical_vmem_bytes():
    try:
        return int(pltpu.get_tpu_info().vmem_capacity_bytes)
    except Exception:
        return 64 * 1024 * 1024   # v7x per-core VMEM (most conservative)


def self_output(hidden_states, input_tensor, weight, bias, gamma, beta,
                *, eps=1e-12, tile_rows=512, tile_k=None,
                force_k_tiling=False):
    """Fused Linear + (eval-mode dropout) + residual add + LayerNorm.

    hidden_states, input_tensor: (B, S, D)
    weight: (D, D) PyTorch Linear weight (out_features, in_features)
    bias, gamma, beta: (D,)
    """
    B, S, D = hidden_states.shape
    N = B * S
    act_dtype = hidden_states.dtype
    act_bytes = jnp.dtype(act_dtype).itemsize

    # One-time weight prep (folded under jit): transpose to (in, out) layout
    # and match the activation dtype so the MXU runs its fast (bf16) path.
    wt = weight.T.astype(act_dtype)
    w_bytes = jnp.dtype(wt.dtype).itemsize

    x2 = hidden_states.reshape(N, D)
    r2 = input_tensor.reshape(N, D)

    # Row tile: multiple of 8 (sublane), never bigger than the 8-aligned N.
    tm = min(_round_up(tile_rows, 8), _round_up(N, 8))
    n_rows = N
    if tm > N:
        # Only when N is smaller than one tile and N % 8 != 0: pad fewer than
        # 8 rows so the single block is sublane-aligned.  Negligible traffic.
        n_rows = tm
        x2 = jnp.pad(x2, ((0, n_rows - N), (0, 0)))
        r2 = jnp.pad(r2, ((0, n_rows - N), (0, 0)))
    grid_rows = pl.cdiv(n_rows, tm)

    b2 = bias.reshape(1, D).astype(jnp.float32)
    g2 = gamma.reshape(1, D).astype(jnp.float32)
    be2 = beta.reshape(1, D).astype(jnp.float32)

    phys_vmem = _physical_vmem_bytes()
    budget = int(phys_vmem * 0.6)   # threshold for keeping weight resident
    cap = int(phys_vmem * 0.85)     # never request more than this

    def estimate(tm_, tk_, ktiled):
        tiles = (2 * tm_ * tk_ * act_bytes          # x (double-buffered)
                 + 2 * 2 * tm_ * D * act_bytes)     # residual + output tiles
        wslab = (2 if ktiled else 1) * tk_ * D * w_bytes
        acc = tm_ * D * 4 if ktiled else 0
        temps = 5 * tm_ * D * 4                     # f32 intermediates in body
        params = 3 * D * 4
        return tiles + wslab + acc + temps + params + (1 << 20)

    est_full = estimate(tm, D, ktiled=False)
    use_ktiled = force_k_tiling or est_full > budget
    if use_ktiled and not force_k_tiling and D % 128 != 0:
        use_ktiled = False          # cannot tile K cleanly; keep weight resident

    cost = pl.CostEstimate(
        flops=2 * n_rows * D * D + 10 * n_rows * D,
        transcendentals=n_rows,     # one rsqrt per row
        bytes_accessed=3 * n_rows * D * act_bytes + D * D * w_bytes + 3 * D * 4,
    )

    if not use_ktiled:
        vmem_limit = int(min(max(int(1.3 * est_full), 32 * 1024 * 1024), cap))
        out = pl.pallas_call(
            functools.partial(_self_output_kernel, eps=eps),
            out_shape=jax.ShapeDtypeStruct((n_rows, D), act_dtype),
            grid_spec=pltpu.PrefetchScalarGridSpec(
                num_scalar_prefetch=0,
                grid=(grid_rows,),
                in_specs=[
                    pl.BlockSpec((tm, D), lambda i: (i, 0)),        # x rows
                    pl.BlockSpec((tm, D), lambda i: (i, 0)),        # residual
                    pl.BlockSpec((D, D), lambda i: (0, 0),
                                 pipeline_mode=pl.Buffered(1)),     # weight
                    pl.BlockSpec((1, D), lambda i: (0, 0),
                                 pipeline_mode=pl.Buffered(1)),     # bias
                    pl.BlockSpec((1, D), lambda i: (0, 0),
                                 pipeline_mode=pl.Buffered(1)),     # gamma
                    pl.BlockSpec((1, D), lambda i: (0, 0),
                                 pipeline_mode=pl.Buffered(1)),     # beta
                ],
                out_specs=pl.BlockSpec((tm, D), lambda i: (i, 0)),
            ),
            compiler_params=pltpu.CompilerParams(
                dimension_semantics=("parallel",),
                vmem_limit_bytes=vmem_limit),
            cost_estimate=cost,
        )(x2, r2, wt, b2, g2, be2)
    else:
        # Large-d_model fallback: only a (tk, D) weight slab resident per step.
        if tile_k is not None:
            tk = tile_k
        else:
            tk = 128
            for cand in (2048, 1024, 512, 256, 128):
                if D % cand == 0 and estimate(tm, cand, True) <= budget:
                    tk = cand
                    break
        assert D % tk == 0 and (tk % 128 == 0 or tk == D), \
            "tile_k must divide d_model and be a multiple of 128"
        est = estimate(tm, tk, ktiled=True)
        vmem_limit = int(min(max(int(1.3 * est), 32 * 1024 * 1024), cap))
        out = pl.pallas_call(
            functools.partial(_self_output_kernel_ktiled, eps=eps),
            out_shape=jax.ShapeDtypeStruct((n_rows, D), act_dtype),
            grid_spec=pltpu.PrefetchScalarGridSpec(
                num_scalar_prefetch=0,
                grid=(grid_rows, D // tk),
                in_specs=[
                    pl.BlockSpec((tm, tk), lambda i, k: (i, k)),    # x K slab
                    pl.BlockSpec((tm, D), lambda i, k: (i, 0)),     # residual
                    pl.BlockSpec((tk, D), lambda i, k: (k, 0)),     # weight slab
                    pl.BlockSpec((1, D), lambda i, k: (0, 0),
                                 pipeline_mode=pl.Buffered(1)),     # bias
                    pl.BlockSpec((1, D), lambda i, k: (0, 0),
                                 pipeline_mode=pl.Buffered(1)),     # gamma
                    pl.BlockSpec((1, D), lambda i, k: (0, 0),
                                 pipeline_mode=pl.Buffered(1)),     # beta
                ],
                out_specs=pl.BlockSpec((tm, D), lambda i, k: (i, 0)),
                scratch_shapes=[pltpu.VMEM((tm, D), jnp.float32)],
            ),
            compiler_params=pltpu.CompilerParams(
                dimension_semantics=("parallel", "arbitrary"),
                vmem_limit_bytes=vmem_limit),
            cost_estimate=cost,
        )(x2, r2, wt, b2, g2, be2)

    if n_rows != N:
        out = out[:N]
    return out.reshape(B, S, D)


def self_output_ref(hidden_states, input_tensor, weight, bias, gamma, beta,
                    *, eps=1e-12):
    """Pure-JAX reference matching the PyTorch module (eval mode)."""
    y = jnp.einsum("bsd,od->bso", hidden_states, weight) + bias
    h = y + input_tensor
    mean = jnp.mean(h, axis=-1, keepdims=True)
    var = jnp.mean((h - mean) ** 2, axis=-1, keepdims=True)
    return (h - mean) / jnp.sqrt(var + eps) * gamma + beta


if __name__ == "__main__":
    eps = 1e-12
    B, S, D = 2, 8, 32   # batch=2, seq=8, d_model=32

    key = jax.random.PRNGKey(0)
    k1, k2, k3, k4 = jax.random.split(key, 4)
    hidden_states = jax.random.normal(k1, (B, S, D), dtype=jnp.float32)
    input_tensor = jax.random.normal(k2, (B, S, D), dtype=jnp.float32)
    bound = 1.0 / (D ** 0.5)
    weight = jax.random.uniform(k3, (D, D), minval=-bound, maxval=bound,
                                dtype=jnp.float32)
    bias = jax.random.uniform(k4, (D,), minval=-bound, maxval=bound,
                              dtype=jnp.float32)
    gamma = jnp.ones((D,), dtype=jnp.float32)
    beta = jnp.zeros((D,), dtype=jnp.float32)

    out = jax.block_until_ready(
        self_output(hidden_states, input_tensor, weight, bias, gamma, beta,
                    eps=eps))
    ref = self_output_ref(hidden_states, input_tensor, weight, bias, gamma,
                          beta, eps=eps)
    assert out.shape == (B, S, D)
    assert jnp.allclose(out, ref, atol=1e-5, rtol=1e-5), "mismatch (resident)"

    # Also exercise the K-tiled large-d_model fallback on a small problem.
    D2 = 256
    k5, k6, k7, k8 = jax.random.split(jax.random.PRNGKey(1), 4)
    hs2 = jax.random.normal(k5, (B, S, D2), dtype=jnp.float32)
    it2 = jax.random.normal(k6, (B, S, D2), dtype=jnp.float32)
    b2 = 1.0 / (D2 ** 0.5)
    w2 = jax.random.uniform(k7, (D2, D2), minval=-b2, maxval=b2,
                            dtype=jnp.float32)
    bi2 = jax.random.uniform(k8, (D2,), minval=-b2, maxval=b2,
                             dtype=jnp.float32)
    g2 = jnp.ones((D2,), dtype=jnp.float32)
    be2 = jnp.zeros((D2,), dtype=jnp.float32)
    out2 = jax.block_until_ready(
        self_output(hs2, it2, w2, bi2, g2, be2, eps=eps,
                    tile_k=128, force_k_tiling=True))
    ref2 = self_output_ref(hs2, it2, w2, bi2, g2, be2, eps=eps)
    assert out2.shape == (B, S, D2)
    assert jnp.allclose(out2, ref2, atol=1e-3, rtol=1e-3), "mismatch (K-tiled)"

    print("KERNEL_OK")
</pallas_src>

<mosaic_0001>
module attributes {stable_mosaic.version = 11 : i64} {
  func.func @_self_output_kernel(%arg0: i32, %arg1: memref<16x32xf32, #tpu.memory_space<vmem>>, %arg2: memref<16x32xf32, #tpu.memory_space<vmem>>, %arg3: memref<32x32xf32, #tpu.memory_space<vmem>>, %arg4: memref<1x32xf32, #tpu.memory_space<vmem>>, %arg5: memref<1x32xf32, #tpu.memory_space<vmem>>, %arg6: memref<1x32xf32, #tpu.memory_space<vmem>>, %arg7: memref<16x32xf32, #tpu.memory_space<vmem>>) attributes {dimension_semantics = [#tpu.dimension_semantics<parallel>], iteration_bounds = array<i64: 1>, scalar_prefetch = 0 : i64, scratch_operands = 0 : i64, tpu.core_type = #tpu.core_type<tc>, window_params = [{transform_indices = @transform_0, window_bounds = array<i64: 16, 32>}, {transform_indices = @transform_1, window_bounds = array<i64: 16, 32>}, {pipeline_mode = #tpu.pipeline_mode<synchronous>, transform_indices = @transform_2, window_bounds = array<i64: 32, 32>}, {pipeline_mode = #tpu.pipeline_mode<synchronous>, transform_indices = @transform_3, window_bounds = array<i64: 1, 32>}, {pipeline_mode = #tpu.pipeline_mode<synchronous>, transform_indices = @transform_4, window_bounds = array<i64: 1, 32>}, {pipeline_mode = #tpu.pipeline_mode<synchronous>, transform_indices = @transform_5, window_bounds = array<i64: 1, 32>}, {transform_indices = @transform_6, window_bounds = array<i64: 16, 32>}]} {
    %c0 = arith.constant 0 : index
    %c0_0 = arith.constant 0 : index
    %0 = vector.load %arg1[%c0, %c0_0] : memref<16x32xf32, #tpu.memory_space<vmem>>, vector<16x32xf32>
    %c0_1 = arith.constant 0 : index
    %c0_2 = arith.constant 0 : index
    %1 = vector.load %arg3[%c0_1, %c0_2] : memref<32x32xf32, #tpu.memory_space<vmem>>, vector<32x32xf32>
    %cst = arith.constant dense<0.000000e+00> : vector<16x32xf32>
    %2 = tpu.matmul %0, %1, %cst {dimension_numbers = #tpu.dot_dimension_numbers<[1], [0], [0], [1], [0, 0, 1, 1], [], []>} : vector<16x32xf32>, vector<32x32xf32>, vector<16x32xf32> -> vector<16x32xf32>
    %c0_3 = arith.constant 0 : index
    %c0_4 = arith.constant 0 : index
    %3 = vector.load %arg4[%c0_3, %c0_4] : memref<1x32xf32, #tpu.memory_space<vmem>>, vector<1x32xf32>
    %4 = vector.broadcast %3 : vector<1x32xf32> to vector<16x32xf32>
    %5 = arith.addf %2, %4 : vector<16x32xf32>
    %c0_5 = arith.constant 0 : index
    %c0_6 = arith.constant 0 : index
    %6 = vector.load %arg2[%c0_5, %c0_6] : memref<16x32xf32, #tpu.memory_space<vmem>>, vector<16x32xf32>
    %7 = arith.addf %5, %6 : vector<16x32xf32>
    %c0_7 = arith.constant 0 : index
    %c0_8 = arith.constant 0 : index
    %8 = vector.load %arg5[%c0_7, %c0_8] : memref<1x32xf32, #tpu.memory_space<vmem>>, vector<1x32xf32>
    %c0_9 = arith.constant 0 : index
    %c0_10 = arith.constant 0 : index
    %9 = vector.load %arg6[%c0_9, %c0_10] : memref<1x32xf32, #tpu.memory_space<vmem>>, vector<1x32xf32>
    %cst_11 = arith.constant dense<0.000000e+00> : vector<16xf32>
    %10 = vector.multi_reduction <add>, %7, %cst_11 [1] : vector<16x32xf32> to vector<16xf32>
    %11 = vector.shape_cast %10 : vector<16xf32> to vector<16x1xf32>
    %cst_12 = arith.constant 3.200000e+01 : f32
    %12 = vector.broadcast %cst_12 : f32 to vector<16x1xf32>
    %13 = arith.divf %11, %12 : vector<16x1xf32>
    %14 = vector.broadcast %13 : vector<16x1xf32> to vector<16x32xf32>
    %15 = arith.subf %7, %14 : vector<16x32xf32>
    %16 = arith.mulf %15, %15 : vector<16x32xf32>
    %cst_13 = arith.constant dense<0.000000e+00> : vector<16xf32>
    %17 = vector.multi_reduction <add>, %16, %cst_13 [1] : vector<16x32xf32> to vector<16xf32>
    %18 = vector.shape_cast %17 : vector<16xf32> to vector<16x1xf32>
    %cst_14 = arith.constant 3.200000e+01 : f32
    %19 = vector.broadcast %cst_14 : f32 to vector<16x1xf32>
    %20 = arith.divf %18, %19 : vector<16x1xf32>
    %cst_15 = arith.constant 9.99999996E-13 : f32
    %21 = vector.broadcast %cst_15 : f32 to vector<16x1xf32>
    %22 = arith.addf %20, %21 : vector<16x1xf32>
    %23 = math.rsqrt %22 : vector<16x1xf32>
    %24 = vector.broadcast %23 : vector<16x1xf32> to vector<16x32xf32>
    %25 = arith.mulf %15, %24 : vector<16x32xf32>
    %26 = vector.broadcast %8 : vector<1x32xf32> to vector<16x32xf32>
    %27 = arith.mulf %25, %26 : vector<16x32xf32>
    %28 = vector.broadcast %9 : vector<1x32xf32> to vector<16x32xf32>
    %29 = arith.addf %27, %28 : vector<16x32xf32>
    %c0_16 = arith.constant 0 : index
    %c0_17 = arith.constant 0 : index
    %30 = vector.load %arg7[%c0_16, %c0_17] : memref<16x32xf32, #tpu.memory_space<vmem>>, vector<16x32xf32>
    tpu.vector_store %arg7[%c0_16, %c0_17], %29 {strides = array<i32>} : memref<16x32xf32, #tpu.memory_space<vmem>>, vector<16x32xf32>,
    return
  }
  func.func @transform_0(%arg0: i32) -> (i32, i32) {
    %c0_i32 = arith.constant 0 : i32
    %c0_i32_0 = arith.constant 0 : i32
    return %arg0, %c0_i32 : i32, i32
  }
  func.func @transform_1(%arg0: i32) -> (i32, i32) {
    %c0_i32 = arith.constant 0 : i32
    %c0_i32_0 = arith.constant 0 : i32
    return %arg0, %c0_i32 : i32, i32
  }
  func.func @transform_2(%arg0: i32) -> (i32, i32) {
    %c0_i32 = arith.constant 0 : i32
    %c0_i32_0 = arith.constant 0 : i32
    %c0_i32_1 = arith.constant 0 : i32
    return %c0_i32, %c0_i32_0 : i32, i32
  }
  func.func @transform_3(%arg0: i32) -> (i32, i32) {
    %c0_i32 = arith.constant 0 : i32
    %c0_i32_0 = arith.constant 0 : i32
    %c0_i32_1 = arith.constant 0 : i32
    return %c0_i32, %c0_i32_0 : i32, i32
  }
  func.func @transform_4(%arg0: i32) -> (i32, i32) {
    %c0_i32 = arith.constant 0 : i32
    %c0_i32_0 = arith.constant 0 : i32
    %c0_i32_1 = arith.constant 0 : i32
    return %c0_i32, %c0_i32_0 : i32, i32
  }
  func.func @transform_5(%arg0: i32) -> (i32, i32) {
    %c0_i32 = arith.constant 0 : i32
    %c0_i32_0 = arith.constant 0 : i32
    %c0_i32_1 = arith.constant 0 : i32
    return %c0_i32, %c0_i32_0 : i32, i32
  }
  func.func @transform_6(%arg0: i32) -> (i32, i32) {
    %c0_i32 = arith.constant 0 : i32
    %c0_i32_0 = arith.constant 0 : i32
    return %arg0, %c0_i32 : i32, i32
  }
}

</mosaic_0001>

<bundles_post_ra>
// kernel: tpu_custom_call.1
= control target key start
LH: loop header
LB: loop body
LE: loop exit
PB: predicated region body
PF: predicated region fallthrough
CT: control target
= control target key end

     0   :  { %11 = vsyncpa [#allocation3], 0  ;;  %s488_s0 = inlined_call_operand.hbm [shape: f32[16,32], index: 0, kind: input, shape index: {}]   ;;  %s489_s1 = inlined_call_operand.hbm [shape: f32[16,32], index: 1, kind: input, shape index: {}]   ;;  %s490_s2 = inlined_call_operand.hbm [shape: f32[32,32], index: 2, kind: input, shape index: {}]   ;;  %s491_s3 = inlined_call_operand.vmem [shape: f32[1,32], index: 3, kind: input, shape index: {}]   ;;  %s492_s4 = inlined_call_operand.vmem [shape: f32[1,32], index: 4, kind: input, shape index: {}]   ;;  %s493_s5 = inlined_call_operand.vmem [shape: f32[1,32], index: 5, kind: input, shape index: {}]   ;;  %s494_s6 = inlined_call_operand.hbm [shape: f32[16,32], index: 6, kind: output, shape index: {}]  }
   0x1   :  { %12 = vsyncpa [#allocation6], 0 }
   0x2   :  { %13 = vsyncpa [#allocation4], 0  ;;  %s363_s21 = smov [#allocation5]   ;;  %s364_s23 = smov [#allocation2]  }
   0x3   :  { %s31_s22 = sshll.u32 %s363_s21, 4  ;;  %s19_s24 = sshll.u32 %s364_s23, 4  ;;  %s32_s22 = int_to_ptr.vmem [resolvable:$true] %s31_s22  ;;  %s404_s24 = int_to_ptr.vmem [resolvable:$true] %s19_s24 }
   0x4   :  { %s269_s27 = scalar_lea.hbm %s489_s1, 256 }
   0x5   :  { %p270_p0 = scmp.ne.s32.totalorder %s489_s1, %s269_s27  ;;  %p273_p1 = scmp.lt.u32.totalorder %s269_s27, %s489_s1 }
   0x7   :  { %p275_p2 = pnand %p273_p1, %p270_p0 }
   0x9   :  { %278 = shalt.err (!%p275_p2)
}
   0xa   :  { %s279_s8 = scalar_lea.vmem %s32_s22, 256  ;;  %p284_p4 = scmp.lt.s32.totalorder %s32_s22, %s32_s22 }
   0xb   :  { %p280_p3 = scmp.ne.s32.totalorder %s32_s22, %s279_s8  ;;  %p285_p5 = scmp.lt.s32.totalorder %s279_s8, %s279_s8 }
   0xd   :  { %p286_p6 = por %p285_p5, %p284_p4 }
   0xf   :  { %p287_p7 = pnand %p286_p6, %p280_p3 }
  0x11   :  { %290 = shalt.err (!%p287_p7)
}
  0x12   :  { %s365_s9 = smov 128   ;;  %s366_s10 = smov 8  }
  0x13   :  { %37 = dma.hbm_to_vmem [thread:$0]  %s489_s1, 256, %s32_s22, [#allocation6], %s365_s9, %s365_s9, %s366_s10  }
  0x14   :  { %s291_s15 = scalar_lea.hbm %s488_s0, 256 }
  0x15   :  { %p292_p8 = scmp.ne.s32.totalorder %s488_s0, %s291_s15  ;;  %p295_p9 = scmp.lt.u32.totalorder %s291_s15, %s488_s0 }
  0x17   :  { %p297_p10 = pnand %p295_p9, %p292_p8 }
  0x19   :  { %300 = shalt.err (!%p297_p10)
}
  0x1a   :  { %s301_s20 = scalar_lea.vmem %s404_s24, 256  ;;  %p306_p12 = scmp.lt.s32.totalorder %s404_s24, %s404_s24 }
  0x1b   :  { %p302_p11 = scmp.ne.s32.totalorder %s404_s24, %s301_s20  ;;  %p307_p13 = scmp.lt.s32.totalorder %s301_s20, %s301_s20 }
  0x1d   :  { %p308_p0 = por %p307_p13, %p306_p12 }
  0x1f   :  { %p309_p1 = pnand %p308_p0, %p302_p11 }
  0x21   :  { %312 = shalt.err (!%p309_p1)
}
  0x22   :  { %25 = dma.hbm_to_vmem [thread:$0]  %s488_s0, 256, %s404_s24, [#allocation3], %s365_s9, %s365_s9, %s366_s10  }
  0x23   :  { %s367_s22 = smov [#allocation7]   ;;  %s313_s27 = scalar_lea.hbm %s490_s2, 512 }
  0x24   :  { %s43_s23 = sshll.u32 %s367_s22, 4  ;;  %p314_p2 = scmp.ne.s32.totalorder %s490_s2, %s313_s27  ;;  %s44_s23 = int_to_ptr.vmem [resolvable:$true] %s43_s23 }
  0x25   :  { %p317_p3 = scmp.lt.u32.totalorder %s313_s27, %s490_s2 }
  0x27   :  { %p319_p4 = pnand %p317_p3, %p314_p2 }
  0x29   :  { %322 = shalt.err (!%p319_p4)
}
  0x2a   :  { %s323_s8 = scalar_lea.vmem %s44_s23, 512  ;;  %p328_p6 = scmp.lt.s32.totalorder %s44_s23, %s44_s23 }
  0x2b   :  { %p324_p5 = scmp.ne.s32.totalorder %s44_s23, %s323_s8  ;;  %p329_p7 = scmp.lt.s32.totalorder %s323_s8, %s323_s8 }
  0x2d   :  { %p330_p8 = por %p329_p7, %p328_p6 }
  0x2f   :  { %p331_p9 = pnand %p330_p8, %p324_p5 }
  0x31   :  { %334 = shalt.err (!%p331_p9)
}
  0x32   :  { %49 = dma.hbm_to_vmem [thread:$0]  %s490_s2, 512, %s44_s23, [#allocation6], %s365_s9, %s365_s9, %s366_s10  }
  0x33   :  { %357 = dma.done.wait [#allocation3], 256  }
  0x34   :  { %358 = vsyncadd [#allocation3], 4294967040 }
  0x35   :  { %359 = dma.done.wait [#allocation6], 768  }
  0x36   :  { %360 = vsyncadd [#allocation6], 4294966528  ;;  %vm78_vm0 = vcmask 261120   ;;  %v67_v0 = vld [vmem:[#allocation7] sm:$0xff]  ;;  %v68_v1 = vld [vmem:[#allocation7 + $0x8] sm:$0xff]  ;;  %s368_s15 = smov [#allocation8]  }
  0x37   :  { %v69_v2 = vld [vmem:[#allocation7 + $0x10] sm:$0xff]  ;;  %v251_v3 = vpack.c.bf16 %v68_v1, %v67_v0  ;;  %v70_v4 = vld [vmem:[#allocation7 + $0x18] sm:$0xff]  ;;  %v65_v5 = vld [vmem:[#allocation2] sm:$0xff]  ;;  %s216_s16 = sshll.u32 %s368_s15, 4  ;;  %s217_s16 = int_to_ptr.vmem [resolvable:$true] %s216_s16 }
  0x38   :  { %v255_v6 = vpack.c.bf16 %v70_v4, %v69_v2  ;;  %248 = vmatprep.mubr.msk.f32.mxu0 %vm78_vm0, %v65_v5  ;;  %v66_v7 = vld [vmem:[#allocation2 + $0x8] sm:$0xff]  ;;  %v229_v8 = vld [vmem:[%s491_s3] ss:$0 sm:$0xff]  ;;  %v160_v11 = vld [vmem:[#allocation5] sm:$0xff]  ;;  %s335_s17 = scalar_lea.vmem %s217_s16, 256  ;;  %p340_p11 = scmp.lt.s32.totalorder %s217_s16, %s217_s16 }
  0x39   :  { %252 = vmatprep.subr.bf16.mxu0 %v251_v3  ;;  %v161_v14 = vld [vmem:[#allocation5 + $0x8] sm:$0xff]  ;;  %v232_v36 = vld [vmem:[%s492_s4] ss:$0 sm:$0xff]  ;;  %p336_p10 = scmp.ne.s32.totalorder %s217_s16, %s335_s17  ;;  %p341_p12 = scmp.lt.s32.totalorder %s335_s17, %s335_s17 }
  0x3a   :  { %254 = vmatpush3.bf16.msra.mxu0 %v251_v3  ;;  %v233_v38 = vld [vmem:[%s493_s5] ss:$0 sm:$0xff] }
  0x3b   :  { %256 = vmatprep.subr.bf16.mxu0 %v255_v6  ;;  %p342_p13 = por %p341_p12, %p340_p11 }
  0x3d   :  { %p343_p0 = pnand %p342_p13, %p336_p10 }
  0x3e   :  { %258 = vmatpush3.bf16.msra.mxu0 %v255_v6 }
  0x41   :  { %249 = vmatmul.mubr.msk.f32.vlgmr.msra.gmra.mrb[0].mxu0 %vm78_vm0, %v66_v7 }
 0x114   :  { %v250_v9 = vpop.f32.mrb[0].mxu0 }
 0x115   :  { %v151_v10 = vpop.f32.mrb[1].mxu0  ;;  %v157_v12 = vadd.f32 %v250_v9, %v229_v8 }
 0x116   :  { %v152_v13 = vadd.f32 %v229_v8, %v151_v10 }
 0x117   :  { %v163_v17 = vadd.f32 %v161_v14, %v157_v12 }
 0x118   :  { %v162_v15 = vadd.f32 %v160_v11, %v152_v13 }
 0x119   :  { %v169_v18 = vsel %vm78_vm0, %v163_v17, 0.0 }
 0x11a   :  { %v166_v16 = vsel %vm78_vm0, %v162_v15, 0.0 }
 0x11b   :  { %167 = vadd.xlane.f32.xlu0 %v166_v16 }
 0x11f   :  { %170 = vadd.xlane.f32.xlu0 %v169_v18 }
 0x1a8   :  { %v168_v19 = vpop.xlane.xlu0 %167 }
 0x1a9   :  { %v173_v20 = vmul.f32 0.03125, %v168_v19 }
 0x1ab   :  { %v175_v21 = vsub.f32 %v162_v15, %v173_v20 }
 0x1ac   :  { %v171_v22 = vpop.xlane.xlu0 %170 }
 0x1ad   :  { %v174_v23 = vmul.f32 0.03125, %v171_v22  ;;  %v177_v24 = vmul.f32 %v175_v21, %v175_v21 }
 0x1af   :  { %v176_v25 = vsub.f32 %v163_v17, %v174_v23  ;;  %v179_v26 = vsel %vm78_vm0, %v177_v24, 0.0 }
 0x1b0   :  { %180 = vadd.xlane.f32.xlu1 %v179_v26 }
 0x1b1   :  { %v178_v27 = vmul.f32 %v176_v25, %v176_v25 }
 0x1b3   :  { %v182_v28 = vsel %vm78_vm0, %v178_v27, 0.0 }
 0x1b4   :  { %183 = vadd.xlane.f32.xlu1 %v182_v28 }
 0x23d   :  { %v181_v29 = vpop.xlane.xlu1 %180 }
 0x23e   :  { %v185_v30 = vmul.f32 0.03125, %v181_v29 }
 0x240   :  { %v187_v31 = vadd.f32 1e-12, %v185_v30 }
 0x241   :  { %v184_v32 = vpop.xlane.xlu1 %183 }
 0x242   :  { %265 = vrsqrt.f32 %v187_v31  ;;  %v186_v33 = vmul.f32 0.03125, %v184_v32 }
 0x244   :  { %v188_v34 = vadd.f32 1e-12, %v186_v33 }
 0x246   :  { %267 = vrsqrt.f32 %v188_v34 }
 0x24c   :  { %v266_v35 = vpop.eup %265 }
 0x24d   :  { %v191_v37 = vmul.f32 %v266_v35, %v175_v21 }
 0x24f   :  { %v199_v39 = vmul.f32 %v232_v36, %v191_v37 }
 0x250   :  { %v268_v40 = vpop.eup %267 }
 0x251   :  { %v192_v41 = vmul.f32 %v268_v40, %v176_v25  ;;  %v207_v42 = vadd.f32 %v233_v38, %v199_v39 }
 0x253   :  { %v200_v43 = vmul.f32 %v232_v36, %v192_v41  ;;  %209 = vst.msk [vmem:[#allocation8] sm:$0xff] %vm78_vm0, %v207_v42 }
 0x255   :  { %v208_v44 = vadd.f32 %v233_v38, %v200_v43 }
 0x257   :  { %210 = vst.msk [vmem:[#allocation8 + $0x8] sm:$0xff] %vm78_vm0, %v208_v44 }
 0x258   :  { %346 = shalt.err (!%p343_p0)
}
 0x259   :  { %s347_s18 = scalar_lea.hbm %s494_s6, 256 }
 0x25a   :  { %p348_p1 = scmp.ne.s32.totalorder %s494_s6, %s347_s18  ;;  %p351_p2 = scmp.lt.u32.totalorder %s347_s18, %s494_s6 }
 0x25c   :  { %p353_p3 = pnand %p351_p2, %p348_p1 }
 0x25e   :  { %356 = shalt.err (!%p353_p3)
}
 0x25f   :  { %222 = dma.vmem_to_hbm [thread:$0]  %s217_s16, 256, %s494_s6, [#allocation4], %s365_s9, %s365_s9, %s366_s10  }
 0x260   :  { %361 = dma.done.wait [#allocation4], 256  }
 0x261   :  { %362 = vsyncadd [#allocation4], 4294967040 }
 0x262   :  { %226 = vsyncpa [#allocation3], 1 }
 0x263   :  { %227 = vsyncpa [#allocation6], 1 }
 0x264   :  { %228 = vsyncpa [#allocation4], 1 }

</bundles_post_ra>
